<compile_context>
chip_gen: v7x
topology: tpu7x:2x2x1
jax: 0.10.0
libtpu: 0.0.40
codegen_flags: <defaults>
</compile_context>

<pallas_src>
import jax
import jax.numpy as jnp
from jax import lax
from jax.experimental import pallas as pl
from jax.experimental.pallas import tpu as pltpu


_CHUNK_ROWS = 32      # sublane rows per inner step (4 f32 vregs per channel)
_TARGET_ROWS = 512    # rows (x 128 lanes) per grid step = 65536 pixels


def _conv1x1_kernel(w_ref, b_ref, x_ref, o_ref):
    # w_ref: (Cout, Cin) f32 in SMEM   b_ref: (Cout,) f32 in SMEM
    # x_ref: (1, Cin,  r_tile, 128) VMEM block
    # o_ref: (1, Cout, r_tile, 128) VMEM block
    cout, cin = w_ref.shape
    r_tile = x_ref.shape[2]

    # Read the handful of weights/biases from SMEM once (hoisted out of loops).
    w = [[w_ref[o, c] for c in range(cin)] for o in range(cout)]
    b = [b_ref[o] for o in range(cout)]

    def process(r0, rows):
        # `rows` is a static Python int; `r0` may be a traced scalar.
        xs = [x_ref[0, c, pl.ds(r0, rows), :].astype(jnp.float32)
              for c in range(cin)]
        for o in range(cout):
            acc = xs[0] * w[o][0]
            for c in range(1, cin):
                acc = acc + xs[c] * w[o][c]
            acc = acc + b[o]
            o_ref[0, o, pl.ds(r0, rows), :] = acc.astype(o_ref.dtype)

    n_full = r_tile // _CHUNK_ROWS
    rem = r_tile - n_full * _CHUNK_ROWS

    if n_full > 0:
        def body(i, carry):
            process(pl.multiple_of(i * _CHUNK_ROWS, _CHUNK_ROWS), _CHUNK_ROWS)
            return carry
        lax.fori_loop(0, n_full, body, 0, unroll=True)

    if rem > 0:                       # static tail (< _CHUNK_ROWS rows)
        process(n_full * _CHUNK_ROWS, rem)


def conv1x1_pallas(x_nchw, weight, bias):
    """1x1 conv.  x_nchw: (N, Cin, H, W); weight: (Cout, Cin); bias: (Cout,)."""
    N, Cin, H, W = x_nchw.shape
    Cout, Cin_w = weight.shape
    assert Cin_w == Cin

    HW = H * W
    HW_pad = ((HW + 127) // 128) * 128
    R = HW_pad // 128

    # Keep NCHW; lay pixels out as dense (rows, 128) tiles.  Reshape is free;
    # the pad (only when HW % 128 != 0) is a cheap one-time copy.
    x = x_nchw.reshape(N, Cin, HW)
    if HW_pad != HW:
        x = jnp.pad(x, ((0, 0), (0, 0), (0, HW_pad - HW)))
    x = x.reshape(N, Cin, R, 128)

    # Row tile: bounded (<= _TARGET_ROWS) and either the full extent R or a
    # multiple of 8, so blocks stay a few MiB for any image size.
    r_tile = R if R <= _TARGET_ROWS else _TARGET_ROWS
    n_tiles = pl.cdiv(R, r_tile)

    # v7x: 2 TensorCores share the parallel grid axes — make sure there are at
    # least 2 grid steps when the image is big enough to split.
    if N * n_tiles < 2 and R >= 16:
        r_tile = ((pl.cdiv(R, 2) + 7) // 8) * 8
        n_tiles = pl.cdiv(R, r_tile)

    # Weights/bias stay f32 (a handful of scalars) -> no precision loss.
    w = weight.astype(jnp.float32)
    b = bias.astype(jnp.float32)

    out_dtype = x_nchw.dtype
    itemsize = jnp.dtype(out_dtype).itemsize
    bytes_accessed = (N * Cin * HW_pad * itemsize        # input stream
                      + N * Cout * HW_pad * itemsize     # output stream
                      + w.size * 4 + b.size * 4)         # params (negligible)
    cost = pl.CostEstimate(flops=2 * N * HW_pad * Cin * Cout,
                           transcendentals=0,
                           bytes_accessed=bytes_accessed)

    out = pl.pallas_call(
        _conv1x1_kernel,
        out_shape=jax.ShapeDtypeStruct((N, Cout, R, 128), out_dtype),
        grid=(N, n_tiles),
        in_specs=[
            pl.BlockSpec(memory_space=pltpu.MemorySpace.SMEM),    # weight
            pl.BlockSpec(memory_space=pltpu.MemorySpace.SMEM),    # bias
            pl.BlockSpec((1, Cin, r_tile, 128), lambda n, p: (n, 0, p, 0)),
        ],
        out_specs=pl.BlockSpec((1, Cout, r_tile, 128),
                               lambda n, p: (n, 0, p, 0)),
        compiler_params=pltpu.CompilerParams(
            dimension_semantics=("parallel", "parallel")),
        cost_estimate=cost,
    )(w, b, x)

    # (N, Cout, R, 128) -> (N, Cout, HW_pad) -> crop -> NCHW.  No transposes.
    out = out.reshape(N, Cout, HW_pad)
    if HW_pad != HW:
        out = out[:, :, :HW]
    return out.reshape(N, Cout, H, W)


def multi_conv_forward(x_nchw, params):
    return conv1x1_pallas(x_nchw, params["weight"], params["bias"])


def init_multi_conv_params(input_ch, key):
    # nn.Conv2d default init: uniform with bound 1/sqrt(fan_in).
    kw, kb = jax.random.split(key)
    fan_in = input_ch * 1 * 1
    bound = 1.0 / jnp.sqrt(fan_in)
    weight = jax.random.uniform(kw, (3, input_ch), jnp.float32, -bound, bound)
    bias = jax.random.uniform(kb, (3,), jnp.float32, -bound, bound)
    return {"weight": weight, "bias": bias}


if __name__ == "__main__":
    key = jax.random.PRNGKey(0)
    k_x, k_p = jax.random.split(key)

    N, Cin, H, W = 2, 4, 16, 16
    x = jax.random.normal(k_x, (N, Cin, H, W), dtype=jnp.float32)
    params = init_multi_conv_params(Cin, k_p)

    y = multi_conv_forward(x, params)
    jax.block_until_ready(y)

    # Reference check (same math as nn.Conv2d with kernel_size=1).
    ref = (jnp.einsum("nchw,oc->nohw", x, params["weight"])
           + params["bias"][None, :, None, None])
    assert y.shape == (N, 3, H, W)
    assert jnp.allclose(y, ref, atol=1e-5, rtol=1e-5)

    print("KERNEL_OK")
</pallas_src>

<mosaic_0001>
module attributes {stable_mosaic.version = 11 : i64} {
  func.func @_conv1x1_kernel(%arg0: i32, %arg1: i32, %arg2: memref<3x4xf32, #tpu.memory_space<smem>>, %arg3: memref<3xf32, #tpu.memory_space<smem>>, %arg4: memref<1x4x2x128xf32, #tpu.memory_space<vmem>>, %arg5: memref<1x3x2x128xf32, #tpu.memory_space<vmem>>) attributes {dimension_semantics = [#tpu.dimension_semantics<parallel>, #tpu.dimension_semantics<parallel>], iteration_bounds = array<i64: 2, 1>, scalar_prefetch = 0 : i64, scratch_operands = 0 : i64, tpu.core_type = #tpu.core_type<tc>, window_params = [{transform_indices = @transform_0, window_bounds = array<i64: 3, 4>}, {transform_indices = @transform_1, window_bounds = array<i64: 3>}, {transform_indices = @transform_2, window_bounds = array<i64: 1, 4, 2, 128>}, {transform_indices = @transform_3, window_bounds = array<i64: 1, 3, 2, 128>}]} {
    %c0 = arith.constant 0 : index
    %c0_0 = arith.constant 0 : index
    %0 = memref.load %arg2[%c0, %c0_0] : memref<3x4xf32, #tpu.memory_space<smem>>
    %c0_1 = arith.constant 0 : index
    %c1 = arith.constant 1 : index
    %1 = memref.load %arg2[%c0_1, %c1] : memref<3x4xf32, #tpu.memory_space<smem>>
    %c0_2 = arith.constant 0 : index
    %c2 = arith.constant 2 : index
    %2 = memref.load %arg2[%c0_2, %c2] : memref<3x4xf32, #tpu.memory_space<smem>>
    %c0_3 = arith.constant 0 : index
    %c3 = arith.constant 3 : index
    %3 = memref.load %arg2[%c0_3, %c3] : memref<3x4xf32, #tpu.memory_space<smem>>
    %c1_4 = arith.constant 1 : index
    %c0_5 = arith.constant 0 : index
    %4 = memref.load %arg2[%c1_4, %c0_5] : memref<3x4xf32, #tpu.memory_space<smem>>
    %c1_6 = arith.constant 1 : index
    %c1_7 = arith.constant 1 : index
    %5 = memref.load %arg2[%c1_6, %c1_7] : memref<3x4xf32, #tpu.memory_space<smem>>
    %c1_8 = arith.constant 1 : index
    %c2_9 = arith.constant 2 : index
    %6 = memref.load %arg2[%c1_8, %c2_9] : memref<3x4xf32, #tpu.memory_space<smem>>
    %c1_10 = arith.constant 1 : index
    %c3_11 = arith.constant 3 : index
    %7 = memref.load %arg2[%c1_10, %c3_11] : memref<3x4xf32, #tpu.memory_space<smem>>
    %c2_12 = arith.constant 2 : index
    %c0_13 = arith.constant 0 : index
    %8 = memref.load %arg2[%c2_12, %c0_13] : memref<3x4xf32, #tpu.memory_space<smem>>
    %c2_14 = arith.constant 2 : index
    %c1_15 = arith.constant 1 : index
    %9 = memref.load %arg2[%c2_14, %c1_15] : memref<3x4xf32, #tpu.memory_space<smem>>
    %c2_16 = arith.constant 2 : index
    %c2_17 = arith.constant 2 : index
    %10 = memref.load %arg2[%c2_16, %c2_17] : memref<3x4xf32, #tpu.memory_space<smem>>
    %c2_18 = arith.constant 2 : index
    %c3_19 = arith.constant 3 : index
    %11 = memref.load %arg2[%c2_18, %c3_19] : memref<3x4xf32, #tpu.memory_space<smem>>
    %c0_20 = arith.constant 0 : index
    %12 = memref.load %arg3[%c0_20] : memref<3xf32, #tpu.memory_space<smem>>
    %c1_21 = arith.constant 1 : index
    %13 = memref.load %arg3[%c1_21] : memref<3xf32, #tpu.memory_space<smem>>
    %c2_22 = arith.constant 2 : index
    %14 = memref.load %arg3[%c2_22] : memref<3xf32, #tpu.memory_space<smem>>
    %c0_23 = arith.constant 0 : index
    %c0_24 = arith.constant 0 : index
    %c0_25 = arith.constant 0 : index
    %c0_26 = arith.constant 0 : index
    %15 = vector.load %arg4[%c0_23, %c0_24, %c0_25, %c0_26] : memref<1x4x2x128xf32, #tpu.memory_space<vmem>>, vector<1x1x2x128xf32>
    %16 = vector.shape_cast %15 : vector<1x1x2x128xf32> to vector<2x128xf32>
    %c0_27 = arith.constant 0 : index
    %c1_28 = arith.constant 1 : index
    %c0_29 = arith.constant 0 : index
    %c0_30 = arith.constant 0 : index
    %17 = vector.load %arg4[%c0_27, %c1_28, %c0_29, %c0_30] : memref<1x4x2x128xf32, #tpu.memory_space<vmem>>, vector<1x1x2x128xf32>
    %18 = vector.shape_cast %17 : vector<1x1x2x128xf32> to vector<2x128xf32>
    %c0_31 = arith.constant 0 : index
    %c2_32 = arith.constant 2 : index
    %c0_33 = arith.constant 0 : index
    %c0_34 = arith.constant 0 : index
    %19 = vector.load %arg4[%c0_31, %c2_32, %c0_33, %c0_34] : memref<1x4x2x128xf32, #tpu.memory_space<vmem>>, vector<1x1x2x128xf32>
    %20 = vector.shape_cast %19 : vector<1x1x2x128xf32> to vector<2x128xf32>
    %c0_35 = arith.constant 0 : index
    %c3_36 = arith.constant 3 : index
    %c0_37 = arith.constant 0 : index
    %c0_38 = arith.constant 0 : index
    %21 = vector.load %arg4[%c0_35, %c3_36, %c0_37, %c0_38] : memref<1x4x2x128xf32, #tpu.memory_space<vmem>>, vector<1x1x2x128xf32>
    %22 = vector.shape_cast %21 : vector<1x1x2x128xf32> to vector<2x128xf32>
    %23 = vector.broadcast %0 : f32 to vector<2x128xf32>
    %24 = arith.mulf %16, %23 : vector<2x128xf32>
    %25 = vector.broadcast %1 : f32 to vector<2x128xf32>
    %26 = arith.mulf %18, %25 : vector<2x128xf32>
    %27 = arith.addf %24, %26 : vector<2x128xf32>
    %28 = vector.broadcast %2 : f32 to vector<2x128xf32>
    %29 = arith.mulf %20, %28 : vector<2x128xf32>
    %30 = arith.addf %27, %29 : vector<2x128xf32>
    %31 = vector.broadcast %3 : f32 to vector<2x128xf32>
    %32 = arith.mulf %22, %31 : vector<2x128xf32>
    %33 = arith.addf %30, %32 : vector<2x128xf32>
    %34 = vector.broadcast %12 : f32 to vector<2x128xf32>
    %35 = arith.addf %33, %34 : vector<2x128xf32>
    %c0_39 = arith.constant 0 : index
    %c0_40 = arith.constant 0 : index
    %c0_41 = arith.constant 0 : index
    %c0_42 = arith.constant 0 : index
    %36 = vector.load %arg5[%c0_39, %c0_40, %c0_41, %c0_42] : memref<1x3x2x128xf32, #tpu.memory_space<vmem>>, vector<1x1x2x128xf32>
    %37 = vector.shape_cast %36 : vector<1x1x2x128xf32> to vector<2x128xf32>
    %38 = vector.shape_cast %35 : vector<2x128xf32> to vector<1x1x2x128xf32>
    tpu.vector_store %arg5[%c0_39, %c0_40, %c0_41, %c0_42], %38 {strides = array<i32>} : memref<1x3x2x128xf32, #tpu.memory_space<vmem>>, vector<1x1x2x128xf32>,
    %39 = vector.broadcast %4 : f32 to vector<2x128xf32>
    %40 = arith.mulf %16, %39 : vector<2x128xf32>
    %41 = vector.broadcast %5 : f32 to vector<2x128xf32>
    %42 = arith.mulf %18, %41 : vector<2x128xf32>
    %43 = arith.addf %40, %42 : vector<2x128xf32>
    %44 = vector.broadcast %6 : f32 to vector<2x128xf32>
    %45 = arith.mulf %20, %44 : vector<2x128xf32>
    %46 = arith.addf %43, %45 : vector<2x128xf32>
    %47 = vector.broadcast %7 : f32 to vector<2x128xf32>
    %48 = arith.mulf %22, %47 : vector<2x128xf32>
    %49 = arith.addf %46, %48 : vector<2x128xf32>
    %50 = vector.broadcast %13 : f32 to vector<2x128xf32>
    %51 = arith.addf %49, %50 : vector<2x128xf32>
    %c0_43 = arith.constant 0 : index
    %c1_44 = arith.constant 1 : index
    %c0_45 = arith.constant 0 : index
    %c0_46 = arith.constant 0 : index
    %52 = vector.load %arg5[%c0_43, %c1_44, %c0_45, %c0_46] : memref<1x3x2x128xf32, #tpu.memory_space<vmem>>, vector<1x1x2x128xf32>
    %53 = vector.shape_cast %52 : vector<1x1x2x128xf32> to vector<2x128xf32>
    %54 = vector.shape_cast %51 : vector<2x128xf32> to vector<1x1x2x128xf32>
    tpu.vector_store %arg5[%c0_43, %c1_44, %c0_45, %c0_46], %54 {strides = array<i32>} : memref<1x3x2x128xf32, #tpu.memory_space<vmem>>, vector<1x1x2x128xf32>,
    %55 = vector.broadcast %8 : f32 to vector<2x128xf32>
    %56 = arith.mulf %16, %55 : vector<2x128xf32>
    %57 = vector.broadcast %9 : f32 to vector<2x128xf32>
    %58 = arith.mulf %18, %57 : vector<2x128xf32>
    %59 = arith.addf %56, %58 : vector<2x128xf32>
    %60 = vector.broadcast %10 : f32 to vector<2x128xf32>
    %61 = arith.mulf %20, %60 : vector<2x128xf32>
    %62 = arith.addf %59, %61 : vector<2x128xf32>
    %63 = vector.broadcast %11 : f32 to vector<2x128xf32>
    %64 = arith.mulf %22, %63 : vector<2x128xf32>
    %65 = arith.addf %62, %64 : vector<2x128xf32>
    %66 = vector.broadcast %14 : f32 to vector<2x128xf32>
    %67 = arith.addf %65, %66 : vector<2x128xf32>
    %c0_47 = arith.constant 0 : index
    %c2_48 = arith.constant 2 : index
    %c0_49 = arith.constant 0 : index
    %c0_50 = arith.constant 0 : index
    %68 = vector.load %arg5[%c0_47, %c2_48, %c0_49, %c0_50] : memref<1x3x2x128xf32, #tpu.memory_space<vmem>>, vector<1x1x2x128xf32>
    %69 = vector.shape_cast %68 : vector<1x1x2x128xf32> to vector<2x128xf32>
    %70 = vector.shape_cast %67 : vector<2x128xf32> to vector<1x1x2x128xf32>
    tpu.vector_store %arg5[%c0_47, %c2_48, %c0_49, %c0_50], %70 {strides = array<i32>} : memref<1x3x2x128xf32, #tpu.memory_space<vmem>>, vector<1x1x2x128xf32>,
    return
  }
  func.func @transform_0(%arg0: i32, %arg1: i32) -> (i32, i32) {
    %c0_i32 = arith.constant 0 : i32
    %c0_i32_0 = arith.constant 0 : i32
    %c0_i32_1 = arith.constant 0 : i32
    return %c0_i32, %c0_i32_0 : i32, i32
  }
  func.func @transform_1(%arg0: i32, %arg1: i32) -> i32 {
    %c0_i32 = arith.constant 0 : i32
    %c0_i32_0 = arith.constant 0 : i32
    return %c0_i32 : i32
  }
  func.func @transform_2(%arg0: i32, %arg1: i32) -> (i32, i32, i32, i32) {
    %c0_i32 = arith.constant 0 : i32
    %c0_i32_0 = arith.constant 0 : i32
    %c0_i32_1 = arith.constant 0 : i32
    return %arg0, %c0_i32, %arg1, %c0_i32_0 : i32, i32, i32, i32
  }
  func.func @transform_3(%arg0: i32, %arg1: i32) -> (i32, i32, i32, i32) {
    %c0_i32 = arith.constant 0 : i32
    %c0_i32_0 = arith.constant 0 : i32
    %c0_i32_1 = arith.constant 0 : i32
    return %arg0, %c0_i32, %arg1, %c0_i32_0 : i32, i32, i32, i32
  }
}

</mosaic_0001>

<bundles_post_ra>
// kernel: tpu_custom_call.1
= control target key start
LH: loop header
LB: loop body
LE: loop exit
PB: predicated region body
PF: predicated region fallthrough
CT: control target
= control target key end

     0   :  { %8 = vsyncpa [#allocation5], 0  ;;  %s958_s0 = inlined_call_operand.hbm [shape: f32[3,4], index: 0, kind: input, shape index: {}]   ;;  %s959_s1 = inlined_call_operand.vmem [shape: f32[3], index: 1, kind: input, shape index: {}]   ;;  %s960_s2 = inlined_call_operand.hbm [shape: f32[2,4,2,128], index: 2, kind: input, shape index: {}]   ;;  %s961_s3 = inlined_call_operand.hbm [shape: f32[2,3,2,128], index: 3, kind: output, shape index: {}]  }
   0x1   :  { %9 = vsyncpa [#allocation6], 0 }
   0x2   :  { %10 = vsyncpa [#allocation3], 0 }
   0x3   :  { %12 = vsyncpa [#allocation3 + $0x1], 0 }
   0x4   :  { %13 = vsyncpa [#allocation4], 0 }
   0x5   :  { %15 = vsyncpa [#allocation4 + $0x1], 0  ;;  %s723_s12 = smov 0   ;;  %s725_s13 = smov 0  }
   0x6   :  { %s727_s14 = smov 0   ;;  %s729_s15 = smov 0  }
   0x7   :  { %s731_s16 = smov 0   ;;  %s733_s17 = smov 0  }
   0x8 LB: > { %s421_s18 = sadd.s32 4294967295, %s693_s17   ;;  %s422_s19 = sadd.s32 4294967294, %s693_s17   ;;  %s693_s17 = sphi %s733_s17, %s21_s17   ;;  %s689_s16 = sphi %s731_s16, %s982_s16   ;;  %s685_s15 = sphi %s729_s15, %s981_s15   ;;  %s681_s14 = sphi %s727_s14, %s980_s14   ;;  %s677_s13 = sphi %s725_s13, %s979_s13   ;;  %s673_s12 = sphi %s723_s12, %s978_s12  }
   0x9   : > { %s84_s20 = sadd.s32 1, %s681_s14  ;;  %p91_p0 = scmp.ne.s32.totalorder %s681_s14, %s677_s13 }
   0xa   : > { %p92_p1 = scmp.eq.s32.totalorder %s693_s17, 0  ;;  %p97_p2 = scmp.ne.s32.totalorder %s677_s13, %s673_s12 }
   0xb   : > { %p761_p3 = scmp.eq.s32.totalorder %s421_s18, 0  ;;  %p123_p4 = scmp.eq.s32.totalorder %s421_s18, 1 }
   0xc   : > { %p93_p5 = por %p92_p1, %p91_p0  ;;  %p129_p6 = scmp.eq.s32.totalorder %s422_s19, 1 }
   0xd   : > { %s966_s21 = scalar_select %p761_p3, 1, 0 }
   0xe   : > { %p767_p7 = por %p761_p3, %p97_p2  ;;  %p771_p8 = por %p123_p4, %p91_p0 }
   0xf   : > { %p775_p9 = por %p129_p6, %p97_p2  ;;  %p423_p10 = scmp.ge.s32.totalorder %s693_s17, 1 }
  0x10   : > { %s967_s22 = scalar_select %p767_p7, 1, 0 }
  0x11   : > { %s968_s23 = scalar_select %p771_p8, 1, 0 }
  0x12   : > { %s969_s24 = scalar_select %p775_p9, 1, 0 }
  0x13   : > { %p136_p11 = scmp.lt.s32.totalorder %s693_s17, 3  ;;  %p487_p1 = scmp.lt.s32.totalorder %s693_s17, 2 }
  0x14   : > { %s158_s28 = sshll.u32 %s959_s1, 4  ;;  %s169_s4 = sand.u32 1, %s681_s14   ;;  %s159_s28 = int_to_ptr.vmem [resolvable:$true] %s158_s28 }
  0x15   : > { %p782_p13 = pnand %p423_p10, %p136_p11  ;;  %p792_p4 = pnand %p487_p1, %p93_p5 }
  0x16   : > { %s33_s5 = sadd.s32 1, %s689_s16  ;;  %s545_s8 = scalar_lea.hbm %s958_s0, 64 }
  0x17   : > { %p470_p0 = pneg %p782_p13  ;;  %p546_p5 = scmp.ne.s32.totalorder %s958_s0, %s545_s8 }
  0x18   : > { %p552_p1 = scmp.lt.u32.totalorder %s545_s8, %s958_s0 }
  0x19   : > { %p798_p2 = pnand %p470_p0, %p761_p3 }
  0x1b   : > { %p547_p6 = pneg %p798_p2 }
  0x1d   : > { %p548_p10 = pnand %p547_p6, %p546_p5 }
  0x1f   : > { %p549_p11 = pneg %p548_p10 }
  0x21   : > { %p554_p0 = pnand %p552_p1, %p549_p11 }
  0x23   : > { %557 = shalt.err (!%p554_p0)
}
  0x24   : > { %s695_s19 = smov [#allocation2]   ;;  %s558_s6 = scalar_lea.vmem %s159_s28, 16 }
  0x25   : > { %473 = dma.hbm_to_smem (!%p798_p2), %s958_s0, 64, %s695_s19, [#allocation5]  }
  0x26   : > { %p559_p12 = scmp.ne.s32.totalorder %s159_s28, %s558_s6  ;;  %p566_p7 = scmp.lt.s32.totalorder %s159_s28, %s159_s28 }
  0x27   : > { %p567_p5 = scmp.lt.s32.totalorder %s558_s6, %s558_s6 }
  0x28   : > { %p561_p9 = pnand %p559_p12, %p547_p6 }
  0x29   : > { %p568_p10 = por %p567_p5, %p566_p7 }
  0x2a   : > { %p562_p8 = pneg %p561_p9 }
  0x2c   : > { %p569_p3 = pnand %p568_p10, %p562_p8 }
  0x2e   : > { %572 = shalt.err (!%p569_p3)
}
  0x2f   : > { %s696_s7 = smov [#allocation7]   ;;  %p35_p11 = scmp.ge.s32.totalorder %s33_s5, 2 }
  0x30   : > { %476 = dma.vmem_to_smem (!%p798_p2), %s159_s28, 16, %s696_s7, [#allocation6]  }
  0x31   : > { %s427_s8 = sshll.u32 %s169_s4, 3  ;;  %s455_s9 = sshll.u32 %s689_s16, 7 }
  0x32   : > { %s984_s5 = smov (%p35_p11, %s33_s5), 0  ;;  %s830_s30 = scalar_lea.hbm %s960_s2, %s455_s9 }
  0x33   : > { %s79_s18 = ssub.s32 %s689_s16, %s984_s5  ;;  %s173_s19 = scalar_lea.vmem [#allocation8], %s427_s8 }
  0x34   : > { %s181_s28 = sshll.u32 %s173_s19, 4  ;;  %p82_p3 = scmp.eq.s32.totalorder %s79_s18, 0  ;;  %s834_s28 = int_to_ptr.vmem [resolvable:$true] %s181_s28 }
  0x35   : > { %s843_s27 = scalar_lea.sflag [#allocation3], %s169_s4  ;;  %s573_s6 = scalar_lea.hbm %s830_s30, 128 }
  0x36   : > { %s839_s26 = scalar_select %p82_p3, %s681_s14, %s84_s20  }
  0x37   : > { %p574_p7 = scmp.ne.s32.totalorder %s830_s30, %s573_s6  ;;  %p575_p8 = pneg %p792_p4 }
  0x38   : > { %s578_s9 = scalar_lea.hbm %s960_s2, 256  ;;  %p579_p2 = scmp.lt.u32.totalorder %s830_s30, %s960_s2 }
  0x39   : > { %p576_p9 = pnand %p575_p8, %p574_p7  ;;  %p580_p6 = scmp.lt.u32.totalorder %s578_s9, %s573_s6 }
  0x3a   : > { %p582_p0 = scmp.lt.u32.totalorder %s573_s6, %s830_s30 }
  0x3b   : > { %p577_p12 = pneg %p576_p9  ;;  %p581_p1 = por %p580_p6, %p579_p2 }
  0x3d   : > { %p583_p5 = por %p582_p0, %p581_p1 }
  0x3f   : > { %p584_p10 = pnand %p583_p5, %p577_p12 }
  0x41   : > { %587 = shalt.err (!%p584_p10)
}
  0x42   : > { %s588_s20 = scalar_lea.vmem %s834_s28, 128  ;;  %s697_s4 = smov [#allocation8]  }
  0x43   : > { %p589_p11 = scmp.ne.s32.totalorder %s834_s28, %s588_s20  ;;  %s593_s18 = sshll.u32 %s697_s4, 4  ;;  %s594_s18 = int_to_ptr.vmem [resolvable:$false] %s593_s18 }
  0x44   : > { %s595_s19 = scalar_lea.vmem %s594_s18, 256  ;;  %p596_p9 = scmp.lt.s32.totalorder %s834_s28, %s594_s18 }
  0x45   : > { %p591_p3 = pnand %p589_p11, %p575_p8  ;;  %p597_p2 = scmp.lt.s32.totalorder %s595_s19, %s588_s20 }
  0x47   : > { %p592_p7 = pneg %p591_p3  ;;  %p598_p6 = por %p597_p2, %p596_p9 }
  0x49   : > { %p599_p1 = pnand %p598_p6, %p592_p7 }
  0x4b   : > { %602 = shalt.err (!%p599_p1)
}
  0x4c   : > { %s698_s6 = smov 32   ;;  %s699_s7 = smov 2  }
  0x4d   : > { %480 = dma.hbm_to_vmem [thread:$0]  (!%p792_p4), %s830_s30, 128, %s834_s28, %s843_s27, %s698_s6, %s698_s6, %s699_s7  }
  0x4e   : > { %193 = sbr.rel (%p782_p13) target bundleno = 131 (0x83), region = 32  ;;  %p973_p8 = scmp.ne.s32.totalorder (!%p782_p13), %s966_s21, 0 }
  0x55   : > { %656 = dma.done.wait (%p973_p8), [#allocation5], 64  }
  0x56   : > { %658 = vsyncadd (%p973_p8), [#allocation5], 4294967232 }
  0x57   : > { %660 = dma.done.wait (%p973_p8), [#allocation6], 16  }
  0x58   : > { %662 = vsyncadd (%p973_p8), [#allocation6], 4294967280  ;;  %s882_s8 = sand.u32 1, %s677_s13   ;;  %p974_p13 = scmp.ne.s32.totalorder %s967_s22, 0 }
  0x59   : > { %s433_s25 = sshll.u32 %s882_s8, 3  ;;  %s204_s29 = scalar_lea.sflag [#allocation3], %s882_s8 }
  0x5a   : > { %s207_s30 = scalar_lea.vmem [#allocation8], %s433_s25 }
  0x5b   : > { %664 = dma.done.wait (%p974_p13), %s204_s29, 128  }
  0x5c   : > { %666 = vsyncadd (%p974_p13), %s204_s29, 4294967168 }
  0x5d   : > { %212 = sfence }
  0x5e   : > { %s231_s28 = sld [smem:[#allocation2]]  ;;  %s434_s27 = sld [smem:[#allocation2 + $0x1]]  ;;  %v246_v0 = vld [vmem:[%s207_s30] sm:$0x3]  ;;  %v447_v1 = vld [vmem:[%s207_s30 + $0x2] sm:$0x3] }
  0x5f   : > { %s435_s9 = sld [smem:[#allocation2 + $0x2]]  ;;  %s436_s21 = sld [smem:[#allocation2 + $0x3]]  ;;  %v448_v2 = vld [vmem:[%s207_s30 + $0x4] sm:$0x3]  ;;  %v449_v4 = vld [vmem:[%s207_s30 + $0x6] sm:$0x3] }
  0x60   : > { %s890_s10 = sld [smem:[#allocation7]]  ;;  %s438_s20 = sld [smem:[#allocation2 + $0x81]] }
  0x61   : > { %s437_s11 = sld [smem:[#allocation2 + $0x80]]  ;;  %s439_s4 = sld [smem:[#allocation2 + $0x82]] }
  0x62   : > { %s440_s18 = sld [smem:[#allocation2 + $0x83]]  ;;  %s441_s22 = sld [smem:[#allocation2 + $0x100]] }
  0x63   : > { %s442_s19 = sld [smem:[#allocation2 + $0x101]]  ;;  %s443_s6 = sld [smem:[#allocation2 + $0x102]] }
  0x64   : > { %v253_v3 = vstv %s231_s28  ;;  %v255_v6 = vstv %s434_s27  ;;  %s892_s7 = sld [smem:[#allocation2 + $0x103]]  ;;  %s894_s25 = sld [smem:[#allocation7 + $0x1]] }
  0x65   : > { %v254_v5 = vmul.f32 %v253_v3, %v246_v0  ;;  %v258_v7 = vstv %s435_s9  ;;  %v256_v8 = vmul.f32 %v447_v1, %v255_v6  ;;  %v261_v10 = vstv %s436_s21  ;;  %s456_s29 = smul.u32 6, %s882_s8  ;;  %s897_s30 = sld [smem:[#allocation7 + $0x2]] }
  0x66   : > { %v259_v9 = vmul.f32 %v448_v2, %v258_v7  ;;  %v262_v12 = vmul.f32 %v449_v4, %v261_v10  ;;  %v269_v15 = vstv %s438_s20  ;;  %v264_v21 = vstv %s890_s10  ;;  %s457_s9 = smul.u32 96, %s685_s15  ;;  %s298_s20 = scalar_lea.sflag [#allocation4], %s882_s8 }
  0x67   : > { %v257_v11 = vadd.f32 %v256_v8, %v254_v5  ;;  %v267_v13 = vstv %s437_s11  ;;  %v272_v16 = vstv %s439_s4  ;;  %v270_v18 = vmul.f32 %v447_v1, %v269_v15  ;;  %s230_s28 = scalar_lea.vmem [#allocation9], %s456_s29  ;;  %p975_p12 = scmp.ne.s32.totalorder %s968_s23, 0 }
  0x68   : > { %v268_v14 = vmul.f32 %v267_v13, %v246_v0  ;;  %v273_v19 = vmul.f32 %v448_v2, %v272_v16  ;;  %v275_v20 = vstv %s440_s18  ;;  %v282_v23 = vstv %s441_s22  ;;  %s312_s27 = sshll.u32 %s230_s28, 4  ;;  %s909_s11 = scalar_lea.hbm %s961_s3, %s457_s9  ;;  %s904_s27 = int_to_ptr.vmem [resolvable:$true] %s312_s27 }
  0x69   : > { %v260_v17 = vadd.f32 %v259_v9, %v257_v11  ;;  %v276_v22 = vmul.f32 %v449_v4, %v275_v20  ;;  %v284_v24 = vstv %s442_s19  ;;  %v283_v27 = vmul.f32 %v282_v23, %v246_v0  ;;  %s603_s4 = scalar_lea.vmem %s904_s27, 96  ;;  %s700_s15 = smov [#allocation9]  }
  0x6a   : > { %v271_v26 = vadd.f32 %v270_v18, %v268_v14  ;;  %v285_v28 = vmul.f32 %v447_v1, %v284_v24  ;;  %v287_v29 = vstv %s443_s6  ;;  %v290_v30 = vstv %s892_s7  ;;  %p604_p4 = scmp.ne.s32.totalorder %s904_s27, %s603_s4  ;;  %s607_s18 = sshll.u32 %s700_s15, 4  ;;  %s608_s18 = int_to_ptr.vmem [resolvable:$false] %s607_s18 }
  0x6b   : > { %v263_v25 = vadd.f32 %v262_v12, %v260_v17  ;;  %v288_v34 = vmul.f32 %v448_v2, %v287_v29  ;;  %v278_v35 = vstv %s894_s25  ;;  %v291_v36 = vmul.f32 %v449_v4, %v290_v30  ;;  %s609_s22 = scalar_lea.vmem %s608_s18, 192  ;;  %p610_p10 = scmp.lt.s32.totalorder %s904_s27, %s608_s18 }
  0x6c   : > { %v274_v32 = vadd.f32 %v273_v19, %v271_v26  ;;  %v286_v33 = vadd.f32 %v285_v28, %v283_v27  ;;  %v293_v39 = vstv %s897_s30  ;;  %p605_p0 = pnand %p604_p4, %p975_p12  ;;  %p611_p11 = scmp.lt.s32.totalorder %s609_s22, %s603_s4 }
  0x6d   : > { %v265_v31 = vadd.f32 %v264_v21, %v263_v25 }
  0x6e   : > { %v277_v37 = vadd.f32 %v276_v22, %v274_v32  ;;  %v289_v38 = vadd.f32 %v288_v34, %v286_v33  ;;  %p606_p5 = pneg %p605_p0  ;;  %p612_p3 = por %p611_p11, %p610_p10 }
  0x6f   : > { %266 = vst [vmem:[%s230_s28] sm:$0x3] %v265_v31 }
  0x70   : > { %v279_v40 = vadd.f32 %v278_v35, %v277_v37  ;;  %v292_v41 = vadd.f32 %v291_v36, %v289_v38  ;;  %p613_p7 = pnand %p612_p3, %p606_p5 }
  0x72   : > { %450 = vst [vmem:[%s230_s28 + $0x2] sm:$0x3] %v279_v40  ;;  %v294_v42 = vadd.f32 %v293_v39, %v292_v41 }
  0x74   : > { %451 = vst [vmem:[%s230_s28 + $0x4] sm:$0x3] %v294_v42 }
  0x75   : > { %616 = shalt.err (!%p613_p7)
}
  0x76   : > { %s617_s19 = scalar_lea.hbm %s909_s11, 96  ;;  %s621_s25 = scalar_lea.hbm %s961_s3, 192 }
  0x77   : > { %p618_p9 = scmp.ne.s32.totalorder %s909_s11, %s617_s19  ;;  %p622_p1 = scmp.lt.u32.totalorder %s909_s11, %s961_s3 }
  0x78   : > { %p623_p8 = scmp.lt.u32.totalorder %s621_s25, %s617_s19  ;;  %p625_p4 = scmp.lt.u32.totalorder %s617_s19, %s909_s11 }
  0x79   : > { %p619_p2 = pnand %p618_p9, %p975_p12 }
  0x7a   : > { %p624_p13 = por %p623_p8, %p622_p1 }
  0x7b   : > { %p620_p6 = pneg %p619_p2 }
  0x7c   : > { %p626_p0 = por %p625_p4, %p624_p13 }
  0x7e   : > { %p627_p5 = pnand %p626_p0, %p620_p6 }
  0x80   : > { %630 = shalt.err (!%p627_p5)
}
  0x81   : > { %s701_s28 = smov 32   ;;  %s702_s9 = smov 2  }
  0x82   : > { %468 = dma.vmem_to_hbm [thread:$0]  (%p975_p12), %s904_s27, 96, %s909_s11, %s298_s20, %s701_s28, %s701_s28, %s702_s9  }
  0x83 PF: > { %s327_s21 = sand.u32 1, %s673_s12   ;;  %p976_p10 = scmp.ne.s32.totalorder %s969_s24, 0 }
  0x84   : > { %p977_p11 = scmp.ge.s32.totalorder %s693_s17, 2  ;;  %s328_s10 = scalar_lea.sflag [#allocation4], %s327_s21 }
  0x86   : > { %p482_p3 = pnand %p977_p11, %p976_p10 }
  0x88   : > { %668 = dma.done.wait (!%p482_p3), %s328_s10, 96  }
  0x89   : > { %670 = vsyncadd (!%p482_p3), %s328_s10, 4294967200  ;;  %s21_s17 = sadd.s32 1, %s693_s17   ;;  %s978_s12 = smov %s677_s13 }
  0x8a   : > { %p18_p7 = scmp.ge.s32.totalorder %s21_s17, 4   ;;  %s979_s13 = smov %s681_s14 }
  0x8b   : > { %s980_s14 = smov %s839_s26  ;;  %s981_s15 = smov %s689_s16 }
  0x8c   : > { %s982_s16 = smov %s984_s5  ;;  %20 = sbr.rel (!%p18_p7) target bundleno = 8 (0x8), region = 92 }
  0x93   :  { %333 = vsyncpa [#allocation3], 1 }
  0x94   :  { %335 = vsyncpa [#allocation3 + $0x1], 1 }
  0x95   :  { %336 = vsyncpa [#allocation4], 1 }
  0x96   :  { %338 = vsyncpa [#allocation4 + $0x1], 1 }
  0x97   :  { %339 = vsyncpa [#allocation5], 1 }
  0x98   :  { %341 = vsyncpa [#allocation5 + $0x1], 1 }
  0x99   :  { %342 = vsyncpa [#allocation6], 1 }
  0x9a   :  { %344 = vsyncpa [#allocation6 + $0x1], 1 }

</bundles_post_ra>
